<compile_context>
chip_gen: v7x
topology: tpu7x:2x2x1
jax: 0.10.0
libtpu: 0.0.40
codegen_flags: <defaults>
</compile_context>

<pallas_src>
import jax
import jax.numpy as jnp
from jax.experimental import pallas as pl
from jax.experimental.pallas import tpu as pltpu

H1 = 128
H2 = 64


def _mlp_kernel(x_ref, w1_ref, b1_ref, w2_ref, b2_ref, w3_ref, b3_ref, o_ref):
    # x tile: [TB, F] f32 straight from HBM; cast to bf16 in-register for the
    # MXU (cheap VPU cast, no extra HBM pass).
    x = x_ref[...].astype(jnp.bfloat16)

    # Layer 1: [TB, F] @ [F, 128] on the MXU, f32 accumulation.
    h1 = jnp.dot(x, w1_ref[...], preferred_element_type=jnp.float32) + b1_ref[...]
    h1 = jnp.maximum(h1, 0.0).astype(jnp.bfloat16)

    # Layer 2: [TB, 128] @ [128, 64] on the MXU, f32 accumulation.
    h2 = jnp.dot(h1, w2_ref[...], preferred_element_type=jnp.float32) + b2_ref[...]
    h2 = jnp.maximum(h2, 0.0)

    # Layer 3 has out_features == 1 (lane-sparse on the MXU): VPU broadcast-mul
    # with the [1, 64] weight row + lane reduction.  b3 is an SMEM scalar.
    logits = jnp.sum(h2 * w3_ref[...], axis=-1, keepdims=True) + b3_ref[0, 0]
    o_ref[...] = jax.nn.sigmoid(logits).astype(o_ref.dtype)


def _pick_tile(batch, tile_b):
    """Load-balanced batch tile, multiple of 16 (bf16 sublane pairs)."""
    n_steps = max(1, -(-batch // tile_b))          # ceil(batch / tile_b)
    tb = -(-batch // n_steps)                      # balance rows across steps
    tb = max(16, ((tb + 15) // 16) * 16)
    return tb


def seed_evaluator_forward(x, params, *, tile_b=4096):
    """SeedEvaluator forward pass with a fused, batch-gridded Pallas kernel.

    x: [B, input_size] float32
    params: dict with w1 [in,128], b1 [1,128], w2 [128,64], b2 [1,64],
            w3 [64,1], b3 [1,1]   (weights stored [in, out], i.e. PyTorch W.T)
    returns: [B, 1] float32 in (0, 1)
    """
    B, F = x.shape
    TB = _pick_tile(B, tile_b)
    grid = pl.cdiv(B, TB)

    # Resident bf16 weights (tiny; cast once in the wrapper).  x is NOT cast
    # here -- the kernel casts in-register, avoiding an extra HBM pass.
    w1 = params["w1"].astype(jnp.bfloat16)
    w2 = params["w2"].astype(jnp.bfloat16)
    b1 = params["b1"].astype(jnp.float32)
    b2 = params["b2"].astype(jnp.float32)
    w3_row = params["w3"].reshape(1, H2).astype(jnp.float32)  # [1, 64]
    b3 = params["b3"].reshape(1, 1).astype(jnp.float32)

    # VMEM budget: double-buffered f32 x tile + f32/bf16 intermediates + a
    # generous margin; explicit so big tiles clear v5e's 16 MiB scoped default
    # while the 48 MiB cap keeps headroom under v7x's 64 MiB physical VMEM.
    bytes_per_row = (2 * F * 4          # double-buffered f32 x tile
                     + F * 2            # in-kernel bf16 x copy
                     + H1 * (4 + 2)     # h1 f32 + bf16
                     + H2 * 4           # h2 f32
                     + 2 * 4)           # double-buffered f32 out
    needed = TB * bytes_per_row + (1 << 20)        # + weights/biases/slack
    vmem_limit = min(48 << 20, max(24 << 20, int(needed * 1.25)))

    out = pl.pallas_call(
        _mlp_kernel,
        out_shape=jax.ShapeDtypeStruct((B, 1), jnp.float32),
        grid=(grid,),
        in_specs=[
            pl.BlockSpec((TB, F), lambda i: (i, 0)),    # x: streamed per tile
            pl.BlockSpec((F, H1), lambda i: (0, 0)),    # w1: resident
            pl.BlockSpec((1, H1), lambda i: (0, 0)),    # b1: resident
            pl.BlockSpec((H1, H2), lambda i: (0, 0)),   # w2: resident
            pl.BlockSpec((1, H2), lambda i: (0, 0)),    # b2: resident
            pl.BlockSpec((1, H2), lambda i: (0, 0)),    # w3 row: resident
            pl.BlockSpec((1, 1), lambda i: (0, 0),
                         memory_space=pltpu.MemorySpace.SMEM),  # b3 scalar
        ],
        out_specs=pl.BlockSpec((TB, 1), lambda i: (i, 0)),
        compiler_params=pltpu.CompilerParams(
            # Batch tiles are independent: shard across v7x's 2 TensorCores.
            dimension_semantics=("parallel",),
            vmem_limit_bytes=vmem_limit),
    )(x.astype(jnp.float32), w1, b1, w2, b2, w3_row, b3)

    return out


def init_params(key, input_size=256):
    """Deterministic init mirroring PyTorch nn.Linear defaults
    (uniform(-1/sqrt(fan_in), 1/sqrt(fan_in)) for weight and bias)."""
    def linear(k, fan_in, fan_out):
        kw, kb = jax.random.split(k)
        bound = 1.0 / jnp.sqrt(fan_in)
        # Stored as [in, out] so the kernel does x @ W (== x @ W_pt.T).
        w = jax.random.uniform(kw, (fan_in, fan_out), jnp.float32, -bound, bound)
        b = jax.random.uniform(kb, (1, fan_out), jnp.float32, -bound, bound)
        return w, b

    k1, k2, k3 = jax.random.split(key, 3)
    w1, b1 = linear(k1, input_size, H1)
    w2, b2 = linear(k2, H1, H2)
    w3, b3 = linear(k3, H2, 1)
    return {"w1": w1, "b1": b1, "w2": w2, "b2": b2, "w3": w3, "b3": b3}


def _ref_bf16(x, params):
    """Reference with the same math as the kernel (bf16 MXU ops, f32 acc)."""
    xb = x.astype(jnp.bfloat16)
    h1 = jnp.maximum(
        jnp.dot(xb, params["w1"].astype(jnp.bfloat16),
                preferred_element_type=jnp.float32) + params["b1"], 0.0)
    h2 = jnp.maximum(
        jnp.dot(h1.astype(jnp.bfloat16), params["w2"].astype(jnp.bfloat16),
                preferred_element_type=jnp.float32) + params["b2"], 0.0)
    logits = jnp.sum(h2 * params["w3"].reshape(1, H2), axis=-1,
                     keepdims=True) + params["b3"]
    return jax.nn.sigmoid(logits)


def _ref_f32(x, params):
    """Pure f32 reference matching the PyTorch module."""
    h1 = jnp.maximum(x @ params["w1"] + params["b1"], 0.0)
    h2 = jnp.maximum(h1 @ params["w2"] + params["b2"], 0.0)
    return jax.nn.sigmoid(h2 @ params["w3"] + params["b3"])


if __name__ == "__main__":
    key = jax.random.PRNGKey(0)
    k_params, k_x1, k_x2 = jax.random.split(key, 3)

    input_size = 256
    params = init_params(k_params, input_size=input_size)

    # Case 1: tiny batch (module demo size) -- single grid step, TB > B (ragged).
    x1 = jax.random.normal(k_x1, (8, input_size), dtype=jnp.float32)
    out1 = jax.block_until_ready(seed_evaluator_forward(x1, params))
    assert out1.shape == (8, 1)
    assert bool(jnp.all(jnp.isfinite(out1)))
    assert jnp.allclose(out1, _ref_bf16(x1, params), atol=2e-3, rtol=2e-3)
    assert jnp.allclose(out1, _ref_f32(x1, params), atol=2e-2, rtol=2e-2)

    # Case 2: batch not a multiple of the tile -> multi-step grid with a
    # ragged last block (no wrapper-side padding).
    x2 = jax.random.normal(k_x2, (300, input_size), dtype=jnp.float32)
    out2 = jax.block_until_ready(seed_evaluator_forward(x2, params, tile_b=128))
    assert out2.shape == (300, 1)
    assert bool(jnp.all(jnp.isfinite(out2)))
    assert jnp.allclose(out2, _ref_bf16(x2, params), atol=2e-3, rtol=2e-3)
    assert jnp.allclose(out2, _ref_f32(x2, params), atol=2e-2, rtol=2e-2)

    print("KERNEL_OK")
</pallas_src>

<mosaic_0001>
module attributes {stable_mosaic.version = 11 : i64} {
  func.func @_mlp_kernel(%arg0: i32, %arg1: memref<16x256xf32, #tpu.memory_space<vmem>>, %arg2: memref<256x128xbf16, #tpu.memory_space<vmem>>, %arg3: memref<1x128xf32, #tpu.memory_space<vmem>>, %arg4: memref<128x64xbf16, #tpu.memory_space<vmem>>, %arg5: memref<1x64xf32, #tpu.memory_space<vmem>>, %arg6: memref<1x64xf32, #tpu.memory_space<vmem>>, %arg7: memref<1x1xf32, #tpu.memory_space<smem>>, %arg8: memref<16x1xf32, #tpu.memory_space<vmem>>) attributes {dimension_semantics = [#tpu.dimension_semantics<parallel>], iteration_bounds = array<i64: 1>, scalar_prefetch = 0 : i64, scratch_operands = 0 : i64, tpu.core_type = #tpu.core_type<tc>, window_params = [{transform_indices = @transform_0, window_bounds = array<i64: 16, 256>}, {pipeline_mode = #tpu.pipeline_mode<synchronous>, transform_indices = @transform_1, window_bounds = array<i64: 256, 128>}, {pipeline_mode = #tpu.pipeline_mode<synchronous>, transform_indices = @transform_2, window_bounds = array<i64: 1, 128>}, {pipeline_mode = #tpu.pipeline_mode<synchronous>, transform_indices = @transform_3, window_bounds = array<i64: 128, 64>}, {pipeline_mode = #tpu.pipeline_mode<synchronous>, transform_indices = @transform_4, window_bounds = array<i64: 1, 64>}, {pipeline_mode = #tpu.pipeline_mode<synchronous>, transform_indices = @transform_5, window_bounds = array<i64: 1, 64>}, {transform_indices = @transform_6, window_bounds = array<i64: 1, 1>}, {transform_indices = @transform_7, window_bounds = array<i64: 16, 1>}]} {
    %c0 = arith.constant 0 : index
    %c0_0 = arith.constant 0 : index
    %0 = vector.load %arg1[%c0, %c0_0] : memref<16x256xf32, #tpu.memory_space<vmem>>, vector<16x256xf32>
    %1 = arith.truncf %0 : vector<16x256xf32> to vector<16x256xbf16>
    %c0_1 = arith.constant 0 : index
    %c0_2 = arith.constant 0 : index
    %2 = vector.load %arg2[%c0_1, %c0_2] : memref<256x128xbf16, #tpu.memory_space<vmem>>, vector<256x128xbf16>
    %cst = arith.constant dense<0.000000e+00> : vector<16x128xf32>
    %3 = tpu.matmul %1, %2, %cst {dimension_numbers = #tpu.dot_dimension_numbers<[1], [0], [0], [1], [0, 0, 1, 1], [], []>} : vector<16x256xbf16>, vector<256x128xbf16>, vector<16x128xf32> -> vector<16x128xf32>
    %c0_3 = arith.constant 0 : index
    %c0_4 = arith.constant 0 : index
    %4 = vector.load %arg3[%c0_3, %c0_4] : memref<1x128xf32, #tpu.memory_space<vmem>>, vector<1x128xf32>
    %5 = vector.broadcast %4 : vector<1x128xf32> to vector<16x128xf32>
    %6 = arith.addf %3, %5 : vector<16x128xf32>
    %cst_5 = arith.constant 0.000000e+00 : f32
    %7 = vector.broadcast %cst_5 : f32 to vector<16x128xf32>
    %8 = arith.maximumf %6, %7 : vector<16x128xf32>
    %9 = arith.truncf %8 : vector<16x128xf32> to vector<16x128xbf16>
    %c0_6 = arith.constant 0 : index
    %c0_7 = arith.constant 0 : index
    %10 = vector.load %arg4[%c0_6, %c0_7] : memref<128x64xbf16, #tpu.memory_space<vmem>>, vector<128x64xbf16>
    %cst_8 = arith.constant dense<0.000000e+00> : vector<16x64xf32>
    %11 = tpu.matmul %9, %10, %cst_8 {dimension_numbers = #tpu.dot_dimension_numbers<[1], [0], [0], [1], [0, 0, 1, 1], [], []>} : vector<16x128xbf16>, vector<128x64xbf16>, vector<16x64xf32> -> vector<16x64xf32>
    %c0_9 = arith.constant 0 : index
    %c0_10 = arith.constant 0 : index
    %12 = vector.load %arg5[%c0_9, %c0_10] : memref<1x64xf32, #tpu.memory_space<vmem>>, vector<1x64xf32>
    %13 = vector.broadcast %12 : vector<1x64xf32> to vector<16x64xf32>
    %14 = arith.addf %11, %13 : vector<16x64xf32>
    %cst_11 = arith.constant 0.000000e+00 : f32
    %15 = vector.broadcast %cst_11 : f32 to vector<16x64xf32>
    %16 = arith.maximumf %14, %15 : vector<16x64xf32>
    %c0_12 = arith.constant 0 : index
    %c0_13 = arith.constant 0 : index
    %17 = vector.load %arg6[%c0_12, %c0_13] : memref<1x64xf32, #tpu.memory_space<vmem>>, vector<1x64xf32>
    %18 = vector.broadcast %17 : vector<1x64xf32> to vector<16x64xf32>
    %19 = arith.mulf %16, %18 : vector<16x64xf32>
    %cst_14 = arith.constant dense<0.000000e+00> : vector<16xf32>
    %20 = vector.multi_reduction <add>, %19, %cst_14 [1] : vector<16x64xf32> to vector<16xf32>
    %21 = vector.shape_cast %20 : vector<16xf32> to vector<16x1xf32>
    %c0_15 = arith.constant 0 : index
    %c0_16 = arith.constant 0 : index
    %22 = memref.load %arg7[%c0_15, %c0_16] : memref<1x1xf32, #tpu.memory_space<smem>>
    %23 = vector.broadcast %22 : f32 to vector<16x1xf32>
    %24 = arith.addf %21, %23 : vector<16x1xf32>
    %25 = arith.negf %24 : vector<16x1xf32>
    %26 = math.exp %25 : vector<16x1xf32>
    %cst_17 = arith.constant 1.000000e+00 : f32
    %27 = vector.broadcast %cst_17 : f32 to vector<16x1xf32>
    %28 = arith.addf %27, %26 : vector<16x1xf32>
    %29 = arith.divf %27, %28 : vector<16x1xf32>
    %c0_18 = arith.constant 0 : index
    %c0_19 = arith.constant 0 : index
    %30 = vector.load %arg8[%c0_18, %c0_19] : memref<16x1xf32, #tpu.memory_space<vmem>>, vector<16x1xf32>
    tpu.vector_store %arg8[%c0_18, %c0_19], %29 {strides = array<i32>} : memref<16x1xf32, #tpu.memory_space<vmem>>, vector<16x1xf32>,
    return
  }
  func.func @transform_0(%arg0: i32) -> (i32, i32) {
    %c0_i32 = arith.constant 0 : i32
    %c0_i32_0 = arith.constant 0 : i32
    return %arg0, %c0_i32 : i32, i32
  }
  func.func @transform_1(%arg0: i32) -> (i32, i32) {
    %c0_i32 = arith.constant 0 : i32
    %c0_i32_0 = arith.constant 0 : i32
    %c0_i32_1 = arith.constant 0 : i32
    return %c0_i32, %c0_i32_0 : i32, i32
  }
  func.func @transform_2(%arg0: i32) -> (i32, i32) {
    %c0_i32 = arith.constant 0 : i32
    %c0_i32_0 = arith.constant 0 : i32
    %c0_i32_1 = arith.constant 0 : i32
    return %c0_i32, %c0_i32_0 : i32, i32
  }
  func.func @transform_3(%arg0: i32) -> (i32, i32) {
    %c0_i32 = arith.constant 0 : i32
    %c0_i32_0 = arith.constant 0 : i32
    %c0_i32_1 = arith.constant 0 : i32
    return %c0_i32, %c0_i32_0 : i32, i32
  }
  func.func @transform_4(%arg0: i32) -> (i32, i32) {
    %c0_i32 = arith.constant 0 : i32
    %c0_i32_0 = arith.constant 0 : i32
    %c0_i32_1 = arith.constant 0 : i32
    return %c0_i32, %c0_i32_0 : i32, i32
  }
  func.func @transform_5(%arg0: i32) -> (i32, i32) {
    %c0_i32 = arith.constant 0 : i32
    %c0_i32_0 = arith.constant 0 : i32
    %c0_i32_1 = arith.constant 0 : i32
    return %c0_i32, %c0_i32_0 : i32, i32
  }
  func.func @transform_6(%arg0: i32) -> (i32, i32) {
    %c0_i32 = arith.constant 0 : i32
    %c0_i32_0 = arith.constant 0 : i32
    %c0_i32_1 = arith.constant 0 : i32
    return %c0_i32, %c0_i32_0 : i32, i32
  }
  func.func @transform_7(%arg0: i32) -> (i32, i32) {
    %c0_i32 = arith.constant 0 : i32
    %c0_i32_0 = arith.constant 0 : i32
    return %arg0, %c0_i32 : i32, i32
  }
}

</mosaic_0001>

<bundles_post_ra>
// kernel: tpu_custom_call.1
= control target key start
LH: loop header
LB: loop body
LE: loop exit
PB: predicated region body
PF: predicated region fallthrough
CT: control target
= control target key end

     0   :  { %13 = vsyncpa [#allocation4], 0  ;;  %s558_s24 = smov [#allocation3]   ;;  %s675_s0 = inlined_call_operand.vmem [shape: f32[8,256], index: 0, kind: input, shape index: {}]   ;;  %s676_s1 = inlined_call_operand.hbm [shape: bf16[256,128], index: 1, kind: input, shape index: {}]   ;;  %s677_s2 = inlined_call_operand.vmem [shape: f32[1,128], index: 2, kind: input, shape index: {}]   ;;  %s678_s3 = inlined_call_operand.vmem [shape: bf16[128,64], index: 3, kind: input, shape index: {}]   ;;  %s679_s4 = inlined_call_operand.vmem [shape: f32[1,64], index: 4, kind: input, shape index: {}]   ;;  %s680_s5 = inlined_call_operand.vmem [shape: f32[1,64], index: 5, kind: input, shape index: {}]   ;;  %s681_s6 = inlined_call_operand.<no memory space> [shape: f32[1,1], index: 6, kind: input, shape index: {}]   ;;  %s682_s7 = inlined_call_operand.vmem [shape: f32[8,1], index: 7, kind: output, shape index: {}]  }
   0x1   :  { %s21_s25 = sshll.u32 %s558_s24, 4  ;;  %s534_s28 = scalar_lea.hbm %s676_s1, 2048  ;;  %s22_s25 = int_to_ptr.vmem [resolvable:$true] %s21_s25 }
   0x2   :  { %p535_p0 = scmp.ne.s32.totalorder %s676_s1, %s534_s28  ;;  %p538_p1 = scmp.lt.u32.totalorder %s534_s28, %s676_s1 }
   0x4   :  { %p540_p2 = pnand %p538_p1, %p535_p0 }
   0x6   :  { %543 = shalt.err (!%p540_p2)
}
   0x7   :  { %s544_s10 = scalar_lea.vmem %s22_s25, 2048  ;;  %p549_p4 = scmp.lt.s32.totalorder %s22_s25, %s22_s25 }
   0x8   :  { %p545_p3 = scmp.ne.s32.totalorder %s22_s25, %s544_s10  ;;  %p550_p5 = scmp.lt.s32.totalorder %s544_s10, %s544_s10 }
   0xa   :  { %p551_p6 = por %p550_p5, %p549_p4 }
   0xc   :  { %p552_p7 = pnand %p551_p6, %p545_p3 }
   0xe   :  { %555 = shalt.err (!%p552_p7)
}
   0xf   :  { %s559_s11 = smov 64   ;;  %s560_s12 = smov 4  }
  0x10   :  { %27 = dma.hbm_to_vmem [thread:$0]  %s676_s1, 2048, %s22_s25, [#allocation4], %s559_s11, %s559_s11, %s560_s12  }
  0x11   :  { %556 = dma.done.wait [#allocation4], 2048  }
  0x12   :  { %557 = vsyncadd [#allocation4], 4294965248  ;;  %v561_v0 = vmov 0.0   ;;  %v502_v1 = vld [vmem:[#allocation3 + $0x40] sm:$0xff]   ;;  %v504_v3 = vld [vmem:[#allocation3 + $0x48] sm:$0xff]   ;;  %vm562_vm0 = vmmov 0   ;;  %v358_v57 = vstv %s681_s6 }
  0x13   :  { %477 = vmatprep.subr.bf16.mxu1 %v561_v0  ;;  %v503_v2 = vld [vmem:[#allocation3] sm:$0xff]   ;;  %446 = vmatprep.subr.bf16.mxu0 %v502_v1  ;;  %v505_v4 = vld [vmem:[#allocation3 + $0x8] sm:$0xff]   ;;  %v506_v5 = vld [vmem:[#allocation3 + $0x50] sm:$0xff]   ;;  %vm350_vm1 = vcmask 523264   ;;  %vm373_vm2 = vcmask 7168  }
  0x14   :  { %447 = vmatpush3.bf16.msra.mxu0 %v503_v2  ;;  %v507_v6 = vld [vmem:[#allocation3 + $0x10] sm:$0xff]   ;;  %v508_v7 = vld [vmem:[#allocation3 + $0x58] sm:$0xff]   ;;  %v510_v9 = vld [vmem:[#allocation3 + $0x60] sm:$0xff]   ;;  %493 = vmatprep.mubr.msk.bf16.mxu1 %vm562_vm0, %v561_v0 }
  0x15   :  { %448 = vmatprep.subr.bf16.mxu0 %v504_v3  ;;  %v509_v8 = vld [vmem:[#allocation3 + $0x18] sm:$0xff]   ;;  %v511_v10 = vld [vmem:[#allocation3 + $0x20] sm:$0xff]   ;;  %v512_v11 = vld [vmem:[#allocation3 + $0x68] sm:$0xff]  }
  0x16   :  { %v43_v12 = vld [vmem:[%s675_s0 + $0x8] sm:$0xff]  ;;  %v45_v13 = vld [vmem:[%s675_s0 + $0x18] sm:$0xff]  ;;  %v518_v16 = vld [vmem:[%s678_s3] sm:$0xff]  }
  0x17   :  { %v513_v14 = vld [vmem:[#allocation3 + $0x28] sm:$0xff]   ;;  %v47_v15 = vpack.c.bf16 %v45_v13, %v43_v12  ;;  %v514_v17 = vld [vmem:[#allocation3 + $0x70] sm:$0xff]   ;;  %478 = vmatpush3.bf16.msra.mxu1 %v518_v16  ;;  %v516_v20 = vld [vmem:[#allocation3 + $0x78] sm:$0xff]  }
  0x18   :  { %449 = vmatpush3.bf16.msra.mxu0 %v505_v4  ;;  %v519_v18 = vld [vmem:[%s678_s3 + $0x8] sm:$0xff]   ;;  %479 = vmatprep.subr.bf16.mxu1 %v561_v0  ;;  %v515_v19 = vld [vmem:[#allocation3 + $0x30] sm:$0xff]   ;;  %v517_v22 = vld [vmem:[#allocation3 + $0x38] sm:$0xff]  }
  0x19   :  { %450 = vmatprep.subr.bf16.mxu0 %v506_v5  ;;  %215 = vmatprep.mubr.bf16.mxu0 %v47_v15  ;;  %v520_v21 = vld [vmem:[%s678_s3 + $0x10] sm:$0xff]   ;;  %v42_v23 = vld [vmem:[%s675_s0] sm:$0xff]  ;;  %v521_v25 = vld [vmem:[%s678_s3 + $0x18] sm:$0xff]  }
  0x1a   :  { %v44_v24 = vld [vmem:[%s675_s0 + $0x10] sm:$0xff]  ;;  %v522_v27 = vld [vmem:[%s678_s3 + $0x20] sm:$0xff]   ;;  %v523_v28 = vld [vmem:[%s678_s3 + $0x28] sm:$0xff]  }
  0x1b   :  { %480 = vmatpush3.bf16.msra.mxu1 %v519_v18  ;;  %v46_v26 = vpack.c.bf16 %v44_v24, %v42_v23  ;;  %v524_v29 = vld [vmem:[%s678_s3 + $0x30] sm:$0xff]   ;;  %v525_v30 = vld [vmem:[%s678_s3 + $0x38] sm:$0xff]   ;;  %v417_v32 = vld [vmem:[%s677_s2] ss:$0 sm:$0xff] }
  0x1c   :  { %451 = vmatpush3.bf16.msra.mxu0 %v507_v6  ;;  %481 = vmatprep.subr.bf16.mxu1 %v561_v0  ;;  %v434_v43 = vld [vmem:[%s679_s4] ss:$0 sm:$0xff] }
  0x1d   :  { %452 = vmatprep.subr.bf16.mxu0 %v508_v7  ;;  %v443_v48 = vld [vmem:[%s680_s5] ss:$0 sm:$0xff] }
  0x1f   :  { %482 = vmatpush3.bf16.msra.mxu1 %v520_v21 }
  0x20   :  { %453 = vmatpush3.bf16.msra.mxu0 %v509_v8  ;;  %483 = vmatprep.subr.bf16.mxu1 %v561_v0 }
  0x21   :  { %454 = vmatprep.subr.bf16.mxu0 %v510_v9 }
  0x23   :  { %484 = vmatpush3.bf16.msra.mxu1 %v521_v25 }
  0x24   :  { %455 = vmatpush3.bf16.msra.mxu0 %v511_v10  ;;  %485 = vmatprep.subr.bf16.mxu1 %v561_v0 }
  0x25   :  { %456 = vmatprep.subr.bf16.mxu0 %v512_v11 }
  0x27   :  { %486 = vmatpush3.bf16.msra.mxu1 %v522_v27 }
  0x28   :  { %457 = vmatpush3.bf16.msra.mxu0 %v513_v14  ;;  %487 = vmatprep.subr.bf16.mxu1 %v561_v0 }
  0x29   :  { %458 = vmatprep.subr.bf16.mxu0 %v514_v17 }
  0x2b   :  { %488 = vmatpush3.bf16.msra.mxu1 %v523_v28 }
  0x2c   :  { %459 = vmatpush3.bf16.msra.mxu0 %v515_v19  ;;  %489 = vmatprep.subr.bf16.mxu1 %v561_v0 }
  0x2d   :  { %460 = vmatprep.subr.bf16.mxu0 %v516_v20 }
  0x2f   :  { %490 = vmatpush3.bf16.msra.mxu1 %v524_v29 }
  0x30   :  { %461 = vmatpush3.bf16.msra.mxu0 %v517_v22  ;;  %491 = vmatprep.subr.bf16.mxu1 %v561_v0 }
  0x33   :  { %216 = vmatmul.mubr.bf16.vlgmr.msra.gmra.mrb[0].mxu0 %v46_v26  ;;  %492 = vmatpush3.bf16.msra.mxu1 %v525_v30 }
 0x106   :  { %v462_v31 = vpop.f32.mrb[0].mxu0 }
 0x107   :  { %v463_v33 = vpop.f32.mrb[1].mxu0 }
 0x108   :  { %v464_v34 = vadd.f32 %v463_v33, %v462_v31  ;;  %v465_v35 = vpop.f32.mrb[2].mxu0 }
 0x109   :  { %v466_v36 = vpop.f32.mrb[3].mxu0 }
 0x10a   :  { %v218_v37 = vadd.f32 %v464_v34, %v417_v32  ;;  %v467_v38 = vadd.f32 %v466_v36, %v465_v35 }
 0x10c   :  { %v221_v39 = vadd.f32 %v467_v38, %v417_v32  ;;  %v224_v40 = vmax.f32 %v218_v37, 0.0 }
 0x10e   :  { %v225_v41 = vmax.f32 %v221_v39, 0.0 }
 0x110   :  { %v226_v42 = vpack.c.bf16 %v225_v41, %v224_v40 }
 0x112   :  { %494 = vmatmul.mubr.bf16.vlgmr.msra.gmra.mrb[0].mxu1 %v226_v42 }
 0x1e5   :  { %v332_v44 = vpop.f32.mrb[0].mxu1 }
 0x1e6   :  { %v333_v45 = vadd.f32 %v434_v43, %v332_v44  ;;  %v495_v46 = vpop.f32.mrb[1].mxu1 }
 0x1e7   :  { %v335_v47 = vpop.f32.mrb[2].mxu1 }
 0x1e8   :  { %v339_v49 = vmax.f32 %v333_v45, 0.0  ;;  %v336_v50 = vadd.f32 %v434_v43, %v335_v47  ;;  %v496_v51 = vpop.f32.mrb[3].mxu1 }
 0x1ea   :  { %v340_v52 = vmax.f32 %v336_v50, 0.0  ;;  %v348_v53 = vmul.f32 %v443_v48, %v339_v49 }
 0x1ec   :  { %v351_v54 = vsel %vm350_vm1, %v348_v53, 0.0  ;;  %v349_v55 = vmul.f32 %v443_v48, %v340_v52 }
 0x1ed   :  { %352 = vadd.xlane.f32.xlu0 %v351_v54 }
 0x1ee   :  { %v354_v56 = vsel %vm350_vm1, %v349_v55, 0.0 }
 0x1f1   :  { %355 = vadd.xlane.f32.xlu0 %v354_v56 }
 0x27a   :  { %v353_v58 = vpop.xlane.xlu0 %352 }
 0x27b   :  { %v359_v59 = vadd.f32 %v358_v57, %v353_v58 }
 0x27d   :  { %v444_v60 = vmul.f32 -1.442695, %v359_v59 }
 0x27e   :  { %v356_v61 = vpop.xlane.xlu0 %355 }
 0x27f   :  { %526 = vpow2.f32 %v444_v60  ;;  %v360_v62 = vadd.f32 %v358_v57, %v356_v61 }
 0x281   :  { %v445_v63 = vmul.f32 -1.442695, %v360_v62 }
 0x283   :  { %528 = vpow2.f32 %v445_v63 }
 0x289   :  { %v527_v0 = vpop.eup %526 }
 0x28a   :  { %v367_v1 = vadd.f32 1.0, %v527_v0 }
 0x28c   :  { %530 = vrcp.f32 %v367_v1 }
 0x28d   :  { %v529_v2 = vpop.eup %528 }
 0x28e   :  { %v368_v3 = vadd.f32 1.0, %v529_v2 }
 0x290   :  { %532 = vrcp.f32 %v368_v3 }
 0x296   :  { %v531_v4 = vpop.eup %530 }
 0x297   :  { %374 = vst.msk [vmem:[#allocation5] sm:$0xff] %vm373_vm2, %v531_v4 }
 0x29a   :  { %v533_v5 = vpop.eup %532 }
 0x29e   :  { %v405_v6 = vld [vmem:[#allocation5] sm:$0xff] }
 0x29f   :  { %406 = vst [vmem:[%s682_s7] sm:$0xff] %v405_v6 }
 0x2a0   :  { %412 = vsyncpa [#allocation4], 1 }

</bundles_post_ra>
